<compile_context>
chip_gen: v5e
topology: v5e:2x2
jax: 0.10.0
libtpu: 0.0.40
codegen_flags: <defaults>
</compile_context>

<pallas_src>
import math
import functools

import jax
import jax.numpy as jnp
import numpy as np
from jax.experimental import pallas as pl
from jax.experimental.pallas import tpu as pltpu


def _sa_layer_kernel(x_ref, mask_ref, wqkv_ref, bqkv_ref, wo_ref, bo_ref,
                     out_ref, attn_ref,
                     q_hm, k_hm, v_hm, ctx_sc,
                     *, TB, L, D, H, dph):
    """One grid step: TB batch elements of multi-head attention + final_linear + residual."""
    x = x_ref[...].reshape(TB * L, D)                       # f32 rows, kept for the residual
    x_bf = x.astype(jnp.bfloat16)

    # Fused Q|K|V projection: one (TB*L, D) @ (D, 3D) MXU matmul, f32 accumulation.
    qkv = jnp.dot(x_bf, wqkv_ref[...], preferred_element_type=jnp.float32)
    qkv = (qkv + bqkv_ref[...]).reshape(TB, L, 3 * D)       # (TB, L, 3D) f32

    # Scatter into head-major scratch (TB, H, L, dph): afterwards heads are indexed
    # through leading dims (free) and the MXU is fed bf16.  The loop body is
    # stores only, so Python unrolling keeps no large values live.
    inv_sqrt = jnp.float32(1.0 / math.sqrt(dph))
    for h in range(H):
        lo = h * dph
        q_hm[:, h] = (qkv[:, :, lo:lo + dph] * inv_sqrt).astype(jnp.bfloat16)
        k_hm[:, h] = qkv[:, :, D + lo:D + lo + dph].astype(jnp.bfloat16)
        v_hm[:, h] = qkv[:, :, 2 * D + lo:2 * D + lo + dph].astype(jnp.bfloat16)

    # Scores for all (batch, head) pairs in ONE batched dot_general (K = dph).
    q_all = q_hm[...].reshape(TB * H, L, dph)
    k_all = k_hm[...].reshape(TB * H, L, dph)
    scores = jnp.einsum('bqd,bkd->bqk', q_all, k_all,
                        preferred_element_type=jnp.float32)          # (TB*H, L, L)
    scores = scores.reshape(TB, H, L, L)

    # Mask (TB, 1, L), 1.0 == masked.  Additive -1e18 == masked_fill(-1e18) since
    # |scores| << 1e18 in f32; `keep` reproduces drop_attn.masked_fill(mask, 0).
    m = mask_ref[...].astype(jnp.float32).reshape(TB, 1, 1, L)
    scores = scores + m * jnp.float32(-1e18)

    smax = jnp.max(scores, axis=-1, keepdims=True)
    e = jnp.exp(scores - smax)          # TODO(synk): bf16 exp is a further v6e/v7x EUP win
    denom = jnp.sum(e, axis=-1, keepdims=True)
    attn = e * pl.reciprocal(denom, approx=True)                      # softmax rows (EUP recip)
    attn_ref[...] = attn                 # f32 to match the module's returned dtype

    # TODO(synk): nn.Dropout on attn is identity here (eval mode).
    drop = attn * (jnp.float32(1.0) - m)

    # attn @ V for all (batch, head) pairs in one batched dot_general.
    ctx = jnp.einsum('bqk,bkd->bqd',
                     drop.reshape(TB * H, L, L).astype(jnp.bfloat16),
                     v_hm[...].reshape(TB * H, L, dph),
                     preferred_element_type=jnp.float32)              # (TB*H, L, dph)
    ctx = ctx.reshape(TB, H, L, dph)

    # Reassemble heads onto the feature axis once (H small stores), then fuse
    # final_linear with the SALayerXL residual: ctx @ Wo^T + bo + inputs.
    for h in range(H):
        ctx_sc[:, :, h * dph:(h + 1) * dph] = ctx[:, h].astype(jnp.bfloat16)
    out = (jnp.dot(ctx_sc[...].reshape(TB * L, D), wo_ref[...],
                   preferred_element_type=jnp.float32)
           + bo_ref[...] + x)
    out_ref[...] = out.reshape(TB, L, D)


def _choose_block_b(B, L):
    """Batch elements per grid step.

    Target >= 128 rows (TB*L) per step so the MXU M dimension is filled and the
    ~0.35 us per-step overhead is amortized; TB must divide B exactly (no partial
    blocks) and is forced to 1 when L is not sublane-aligned so the in-kernel
    (TB, L) row merges stay layout-free.
    """
    if L % 8 != 0:
        return 1
    tb = max(1, min(B, pl.cdiv(128, L)))
    while B % tb:
        tb -= 1
    return tb


def _sa_layer_xl(src, mask_b1l, params, head_count):
    """One SALayerXL forward: (attention + final_linear + residual, attns)."""
    B, L, D = src.shape
    H = head_count
    assert D % H == 0
    dph = D // H
    Wq, bq, Wk, bk, Wv, bv, Wo, bo = params

    TB = _choose_block_b(B, L)

    # torch nn.Linear layout: y = x @ W.T + b.  Fuse Q|K|V along the output axis
    # and pre-cast weights to bf16 (MXU feed + half the resident VMEM).
    wqkv_t = jnp.concatenate([Wq.T, Wk.T, Wv.T], axis=1).astype(jnp.bfloat16)   # (D, 3D)
    bqkv = jnp.concatenate([bq, bk, bv]).reshape(1, 3 * D).astype(jnp.float32)
    wo_t = Wo.T.astype(jnp.bfloat16)                                            # (D, D)
    bo2 = bo.reshape(1, D).astype(jnp.float32)
    mask_bf = mask_b1l.astype(jnp.bfloat16)                                     # (B, 1, L)

    kernel = functools.partial(_sa_layer_kernel, TB=TB, L=L, D=D, H=H, dph=dph)

    # Constant index_maps -> weights stay VMEM-resident across the batch grid.
    # TODO(synk): on v7x, pipeline_mode=pl.Buffered(1) on these specs would also
    # drop their (pointless) double buffer.
    wqkv_spec = pl.BlockSpec((D, 3 * D), lambda b: (0, 0))
    bqkv_spec = pl.BlockSpec((1, 3 * D), lambda b: (0, 0))
    wo_spec = pl.BlockSpec((D, D), lambda b: (0, 0))
    bo_spec = pl.BlockSpec((1, D), lambda b: (0, 0))

    out, attns = pl.pallas_call(
        kernel,
        out_shape=(jax.ShapeDtypeStruct((B, L, D), jnp.float32),
                   jax.ShapeDtypeStruct((B, H, L, L), jnp.float32)),
        grid_spec=pltpu.PrefetchScalarGridSpec(
            num_scalar_prefetch=0,
            grid=(B // TB,),
            in_specs=[
                pl.BlockSpec((TB, L, D), lambda b: (b, 0, 0)),   # src block
                pl.BlockSpec((TB, 1, L), lambda b: (b, 0, 0)),   # mask, natural (B,1,L) bf16
                wqkv_spec, bqkv_spec,                            # fused Wqkv^T, bqkv
                wo_spec, bo_spec,                                # Wo^T, bo
            ],
            out_specs=[
                pl.BlockSpec((TB, L, D), lambda b: (b, 0, 0)),        # out (+residual)
                pl.BlockSpec((TB, H, L, L), lambda b: (b, 0, 0, 0)),  # attns (f32)
            ],
            scratch_shapes=[
                pltpu.VMEM((TB, H, L, dph), jnp.bfloat16),   # Q head-major
                pltpu.VMEM((TB, H, L, dph), jnp.bfloat16),   # K head-major
                pltpu.VMEM((TB, H, L, dph), jnp.bfloat16),   # V head-major
                pltpu.VMEM((TB, L, D), jnp.bfloat16),        # ctx reassembly
            ],
        ),
        compiler_params=pltpu.CompilerParams(
            dimension_semantics=("parallel",),
            vmem_limit_bytes=32 * 1024 * 1024,
        ),
    )(src, mask_bf, wqkv_t, bqkv, wo_t, bo2)
    return out, attns


def attn_encoder_xl(src, mask, layers_params, head_count):
    """AttnEncoderXL.forward (eval mode, with_pe=False).

    src:  (B, L, D) float32
    mask: (B, 1, L) or (B, L) bool/{0,1}  (True/1 == masked key position)
    layers_params: list of per-layer (Wq, bq, Wk, bk, Wv, bv, Wo, bo),
                   torch nn.Linear layouts (W: (out, in)).

    Every SALayerXL consumes the same `src` and only the last (mid, attns) is
    returned by the module, so only the final layer is actually executed.
    """
    B, L, D = src.shape
    mask_b1l = mask.reshape(B, 1, L)
    return _sa_layer_xl(src, mask_b1l, layers_params[-1], head_count)


# ---------------------------- pure-JAX reference ------------------------------
def _reference_encoder(src, mask, layers_params, H):
    B, L, D = src.shape
    dph = D // H
    m4 = mask.reshape(B, 1, 1, L)                      # True == masked
    mid = attn = None
    for params in layers_params:                       # faithful to the module loop
        Wq, bq, Wk, bk, Wv, bv, Wo, bo = params
        q = src @ Wq.T + bq
        k = src @ Wk.T + bk
        v = src @ Wv.T + bv
        shape = lambda t: t.reshape(B, L, H, dph).transpose(0, 2, 1, 3)
        q, k, v = shape(q), shape(k), shape(v)
        q = q / math.sqrt(dph)
        scores = jnp.einsum('bhqd,bhkd->bhqk', q, k)
        scores = jnp.where(m4, jnp.float32(-1e18), scores)
        attn = jax.nn.softmax(scores, axis=-1)
        drop_attn = jnp.where(m4, jnp.float32(0.0), attn)   # dropout identity (eval)
        ctx = jnp.einsum('bhqk,bhkd->bhqd', drop_attn, v)
        ctx = ctx.transpose(0, 2, 1, 3).reshape(B, L, D)
        mid = ctx @ Wo.T + bo + src
    return mid, attn


def _xavier_uniform(key, fan_out, fan_in):
    bound = math.sqrt(6.0 / (fan_in + fan_out))
    return jax.random.uniform(key, (fan_out, fan_in), jnp.float32, -bound, bound)


if __name__ == "__main__":
    # Small shapes consistent with the module: batch=2, seq=8, hidden=d_ff=32,
    # heads=4, attn_enc_num_layers=2.
    B, L, D, H, NUM_LAYERS = 2, 8, 32, 4, 2

    key = jax.random.PRNGKey(0)
    key, k_src, k_mask = jax.random.split(key, 3)

    layers_params = []
    for _ in range(NUM_LAYERS):
        key, *ks = jax.random.split(key, 9)
        Wq = _xavier_uniform(ks[0], D, D)
        bq = 0.01 * jax.random.normal(ks[1], (D,), jnp.float32)
        Wk = _xavier_uniform(ks[2], D, D)
        bk = 0.01 * jax.random.normal(ks[3], (D,), jnp.float32)
        Wv = _xavier_uniform(ks[4], D, D)
        bv = 0.01 * jax.random.normal(ks[5], (D,), jnp.float32)
        Wo = _xavier_uniform(ks[6], D, D)
        bo = 0.01 * jax.random.normal(ks[7], (D,), jnp.float32)
        layers_params.append((Wq, bq, Wk, bk, Wv, bv, Wo, bo))

    src = jax.random.normal(k_src, (B, L, D), jnp.float32)
    # Padding-style mask (batch, 1, src_len): True == masked position.
    mask = jax.random.bernoulli(k_mask, 0.25, (B, 1, L))
    # Exercise the fully-masked-row edge case flagged in the review: batch 1 has
    # every key masked (uniform attn rows, zero context, out = bo + src).
    mask = mask.at[1, 0, :].set(True)

    out, attns = attn_encoder_xl(src, mask, layers_params, H)
    out = jax.block_until_ready(out)
    attns = jax.block_until_ready(attns)

    ref_out, ref_attn = _reference_encoder(src, mask, layers_params, H)
    assert out.shape == (B, L, D) and attns.shape == (B, H, L, L)
    # Tolerances cover the conscious accuracy/perf trades: bf16 MXU feeds
    # (f32 accumulation) and the approximate (EUP) reciprocal in the softmax.
    np.testing.assert_allclose(np.asarray(out), np.asarray(ref_out),
                               rtol=5e-2, atol=1e-1)
    np.testing.assert_allclose(np.asarray(attns), np.asarray(ref_attn),
                               rtol=5e-2, atol=2.5e-2)

    print("KERNEL_OK")
</pallas_src>

<mosaic_0001>
module attributes {stable_mosaic.version = 11 : i64} {
  func.func @_sa_layer_kernel(%arg0: i32, %arg1: memref<2x8x32xf32, #tpu.memory_space<vmem>>, %arg2: memref<2x1x8xbf16, #tpu.memory_space<vmem>>, %arg3: memref<32x96xbf16, #tpu.memory_space<vmem>>, %arg4: memref<1x96xf32, #tpu.memory_space<vmem>>, %arg5: memref<32x32xbf16, #tpu.memory_space<vmem>>, %arg6: memref<1x32xf32, #tpu.memory_space<vmem>>, %arg7: memref<2x8x32xf32, #tpu.memory_space<vmem>>, %arg8: memref<2x4x8x8xf32, #tpu.memory_space<vmem>>, %arg9: memref<2x4x8x8xbf16, #tpu.memory_space<vmem>>, %arg10: memref<2x4x8x8xbf16, #tpu.memory_space<vmem>>, %arg11: memref<2x4x8x8xbf16, #tpu.memory_space<vmem>>, %arg12: memref<2x8x32xbf16, #tpu.memory_space<vmem>>) attributes {dimension_semantics = [#tpu.dimension_semantics<parallel>], iteration_bounds = array<i64: 1>, scalar_prefetch = 0 : i64, scratch_operands = 4 : i64, tpu.core_type = #tpu.core_type<tc>, window_params = [{transform_indices = @transform_0, window_bounds = array<i64: 2, 8, 32>}, {transform_indices = @transform_1, window_bounds = array<i64: 2, 1, 8>}, {pipeline_mode = #tpu.pipeline_mode<synchronous>, transform_indices = @transform_2, window_bounds = array<i64: 32, 96>}, {pipeline_mode = #tpu.pipeline_mode<synchronous>, transform_indices = @transform_3, window_bounds = array<i64: 1, 96>}, {pipeline_mode = #tpu.pipeline_mode<synchronous>, transform_indices = @transform_4, window_bounds = array<i64: 32, 32>}, {pipeline_mode = #tpu.pipeline_mode<synchronous>, transform_indices = @transform_5, window_bounds = array<i64: 1, 32>}, {transform_indices = @transform_6, window_bounds = array<i64: 2, 8, 32>}, {transform_indices = @transform_7, window_bounds = array<i64: 2, 4, 8, 8>}]} {
    %c0 = arith.constant 0 : index
    %c0_0 = arith.constant 0 : index
    %c0_1 = arith.constant 0 : index
    %0 = vector.load %arg1[%c0, %c0_0, %c0_1] : memref<2x8x32xf32, #tpu.memory_space<vmem>>, vector<2x8x32xf32>
    %1 = vector.shape_cast %0 : vector<2x8x32xf32> to vector<16x32xf32>
    %2 = arith.truncf %1 : vector<16x32xf32> to vector<16x32xbf16>
    %c0_2 = arith.constant 0 : index
    %c0_3 = arith.constant 0 : index
    %3 = vector.load %arg3[%c0_2, %c0_3] : memref<32x96xbf16, #tpu.memory_space<vmem>>, vector<32x96xbf16>
    %cst = arith.constant dense<0.000000e+00> : vector<16x96xf32>
    %4 = tpu.matmul %2, %3, %cst {dimension_numbers = #tpu.dot_dimension_numbers<[1], [0], [0], [1], [0, 0, 1, 1], [], []>} : vector<16x32xbf16>, vector<32x96xbf16>, vector<16x96xf32> -> vector<16x96xf32>
    %c0_4 = arith.constant 0 : index
    %c0_5 = arith.constant 0 : index
    %5 = vector.load %arg4[%c0_4, %c0_5] : memref<1x96xf32, #tpu.memory_space<vmem>>, vector<1x96xf32>
    %6 = vector.broadcast %5 : vector<1x96xf32> to vector<16x96xf32>
    %7 = arith.addf %4, %6 : vector<16x96xf32>
    %8 = vector.shape_cast %7 : vector<16x96xf32> to vector<2x8x96xf32>
    %9 = vector.extract_strided_slice %8 {offsets = [0, 0, 0], sizes = [2, 8, 8], strides = [1, 1, 1]} : vector<2x8x96xf32> to vector<2x8x8xf32>
    %cst_6 = arith.constant 0.353553385 : f32
    %10 = vector.broadcast %cst_6 : f32 to vector<2x8x8xf32>
    %11 = arith.mulf %9, %10 : vector<2x8x8xf32>
    %12 = arith.truncf %11 : vector<2x8x8xf32> to vector<2x8x8xbf16>
    %c0_7 = arith.constant 0 : index
    %c0_8 = arith.constant 0 : index
    %c0_9 = arith.constant 0 : index
    %c0_10 = arith.constant 0 : index
    %13 = vector.load %arg9[%c0_7, %c0_8, %c0_9, %c0_10] : memref<2x4x8x8xbf16, #tpu.memory_space<vmem>>, vector<2x1x8x8xbf16>
    %14 = vector.shape_cast %13 : vector<2x1x8x8xbf16> to vector<2x8x8xbf16>
    %15 = vector.shape_cast %12 : vector<2x8x8xbf16> to vector<2x1x8x8xbf16>
    tpu.vector_store %arg9[%c0_7, %c0_8, %c0_9, %c0_10], %15 {strides = array<i32>} : memref<2x4x8x8xbf16, #tpu.memory_space<vmem>>, vector<2x1x8x8xbf16>,
    %16 = vector.extract_strided_slice %8 {offsets = [0, 0, 32], sizes = [2, 8, 8], strides = [1, 1, 1]} : vector<2x8x96xf32> to vector<2x8x8xf32>
    %17 = arith.truncf %16 : vector<2x8x8xf32> to vector<2x8x8xbf16>
    %c0_11 = arith.constant 0 : index
    %c0_12 = arith.constant 0 : index
    %c0_13 = arith.constant 0 : index
    %c0_14 = arith.constant 0 : index
    %18 = vector.load %arg10[%c0_11, %c0_12, %c0_13, %c0_14] : memref<2x4x8x8xbf16, #tpu.memory_space<vmem>>, vector<2x1x8x8xbf16>
    %19 = vector.shape_cast %18 : vector<2x1x8x8xbf16> to vector<2x8x8xbf16>
    %20 = vector.shape_cast %17 : vector<2x8x8xbf16> to vector<2x1x8x8xbf16>
    tpu.vector_store %arg10[%c0_11, %c0_12, %c0_13, %c0_14], %20 {strides = array<i32>} : memref<2x4x8x8xbf16, #tpu.memory_space<vmem>>, vector<2x1x8x8xbf16>,
    %21 = vector.extract_strided_slice %8 {offsets = [0, 0, 64], sizes = [2, 8, 8], strides = [1, 1, 1]} : vector<2x8x96xf32> to vector<2x8x8xf32>
    %22 = arith.truncf %21 : vector<2x8x8xf32> to vector<2x8x8xbf16>
    %c0_15 = arith.constant 0 : index
    %c0_16 = arith.constant 0 : index
    %c0_17 = arith.constant 0 : index
    %c0_18 = arith.constant 0 : index
    %23 = vector.load %arg11[%c0_15, %c0_16, %c0_17, %c0_18] : memref<2x4x8x8xbf16, #tpu.memory_space<vmem>>, vector<2x1x8x8xbf16>
    %24 = vector.shape_cast %23 : vector<2x1x8x8xbf16> to vector<2x8x8xbf16>
    %25 = vector.shape_cast %22 : vector<2x8x8xbf16> to vector<2x1x8x8xbf16>
    tpu.vector_store %arg11[%c0_15, %c0_16, %c0_17, %c0_18], %25 {strides = array<i32>} : memref<2x4x8x8xbf16, #tpu.memory_space<vmem>>, vector<2x1x8x8xbf16>,
    %26 = vector.extract_strided_slice %8 {offsets = [0, 0, 8], sizes = [2, 8, 8], strides = [1, 1, 1]} : vector<2x8x96xf32> to vector<2x8x8xf32>
    %cst_19 = arith.constant 0.353553385 : f32
    %27 = vector.broadcast %cst_19 : f32 to vector<2x8x8xf32>
    %28 = arith.mulf %26, %27 : vector<2x8x8xf32>
    %29 = arith.truncf %28 : vector<2x8x8xf32> to vector<2x8x8xbf16>
    %c0_20 = arith.constant 0 : index
    %c1 = arith.constant 1 : index
    %c0_21 = arith.constant 0 : index
    %c0_22 = arith.constant 0 : index
    %30 = vector.load %arg9[%c0_20, %c1, %c0_21, %c0_22] : memref<2x4x8x8xbf16, #tpu.memory_space<vmem>>, vector<2x1x8x8xbf16>
    %31 = vector.shape_cast %30 : vector<2x1x8x8xbf16> to vector<2x8x8xbf16>
    %32 = vector.shape_cast %29 : vector<2x8x8xbf16> to vector<2x1x8x8xbf16>
    tpu.vector_store %arg9[%c0_20, %c1, %c0_21, %c0_22], %32 {strides = array<i32>} : memref<2x4x8x8xbf16, #tpu.memory_space<vmem>>, vector<2x1x8x8xbf16>,
    %33 = vector.extract_strided_slice %8 {offsets = [0, 0, 40], sizes = [2, 8, 8], strides = [1, 1, 1]} : vector<2x8x96xf32> to vector<2x8x8xf32>
    %34 = arith.truncf %33 : vector<2x8x8xf32> to vector<2x8x8xbf16>
    %c0_23 = arith.constant 0 : index
    %c1_24 = arith.constant 1 : index
    %c0_25 = arith.constant 0 : index
    %c0_26 = arith.constant 0 : index
    %35 = vector.load %arg10[%c0_23, %c1_24, %c0_25, %c0_26] : memref<2x4x8x8xbf16, #tpu.memory_space<vmem>>, vector<2x1x8x8xbf16>
    %36 = vector.shape_cast %35 : vector<2x1x8x8xbf16> to vector<2x8x8xbf16>
    %37 = vector.shape_cast %34 : vector<2x8x8xbf16> to vector<2x1x8x8xbf16>
    tpu.vector_store %arg10[%c0_23, %c1_24, %c0_25, %c0_26], %37 {strides = array<i32>} : memref<2x4x8x8xbf16, #tpu.memory_space<vmem>>, vector<2x1x8x8xbf16>,
    %38 = vector.extract_strided_slice %8 {offsets = [0, 0, 72], sizes = [2, 8, 8], strides = [1, 1, 1]} : vector<2x8x96xf32> to vector<2x8x8xf32>
    %39 = arith.truncf %38 : vector<2x8x8xf32> to vector<2x8x8xbf16>
    %c0_27 = arith.constant 0 : index
    %c1_28 = arith.constant 1 : index
    %c0_29 = arith.constant 0 : index
    %c0_30 = arith.constant 0 : index
    %40 = vector.load %arg11[%c0_27, %c1_28, %c0_29, %c0_30] : memref<2x4x8x8xbf16, #tpu.memory_space<vmem>>, vector<2x1x8x8xbf16>
    %41 = vector.shape_cast %40 : vector<2x1x8x8xbf16> to vector<2x8x8xbf16>
    %42 = vector.shape_cast %39 : vector<2x8x8xbf16> to vector<2x1x8x8xbf16>
    tpu.vector_store %arg11[%c0_27, %c1_28, %c0_29, %c0_30], %42 {strides = array<i32>} : memref<2x4x8x8xbf16, #tpu.memory_space<vmem>>, vector<2x1x8x8xbf16>,
    %43 = vector.extract_strided_slice %8 {offsets = [0, 0, 16], sizes = [2, 8, 8], strides = [1, 1, 1]} : vector<2x8x96xf32> to vector<2x8x8xf32>
    %cst_31 = arith.constant 0.353553385 : f32
    %44 = vector.broadcast %cst_31 : f32 to vector<2x8x8xf32>
    %45 = arith.mulf %43, %44 : vector<2x8x8xf32>
    %46 = arith.truncf %45 : vector<2x8x8xf32> to vector<2x8x8xbf16>
    %c0_32 = arith.constant 0 : index
    %c2 = arith.constant 2 : index
    %c0_33 = arith.constant 0 : index
    %c0_34 = arith.constant 0 : index
    %47 = vector.load %arg9[%c0_32, %c2, %c0_33, %c0_34] : memref<2x4x8x8xbf16, #tpu.memory_space<vmem>>, vector<2x1x8x8xbf16>
    %48 = vector.shape_cast %47 : vector<2x1x8x8xbf16> to vector<2x8x8xbf16>
    %49 = vector.shape_cast %46 : vector<2x8x8xbf16> to vector<2x1x8x8xbf16>
    tpu.vector_store %arg9[%c0_32, %c2, %c0_33, %c0_34], %49 {strides = array<i32>} : memref<2x4x8x8xbf16, #tpu.memory_space<vmem>>, vector<2x1x8x8xbf16>,
    %50 = vector.extract_strided_slice %8 {offsets = [0, 0, 48], sizes = [2, 8, 8], strides = [1, 1, 1]} : vector<2x8x96xf32> to vector<2x8x8xf32>
    %51 = arith.truncf %50 : vector<2x8x8xf32> to vector<2x8x8xbf16>
    %c0_35 = arith.constant 0 : index
    %c2_36 = arith.constant 2 : index
    %c0_37 = arith.constant 0 : index
    %c0_38 = arith.constant 0 : index
    %52 = vector.load %arg10[%c0_35, %c2_36, %c0_37, %c0_38] : memref<2x4x8x8xbf16, #tpu.memory_space<vmem>>, vector<2x1x8x8xbf16>
    %53 = vector.shape_cast %52 : vector<2x1x8x8xbf16> to vector<2x8x8xbf16>
    %54 = vector.shape_cast %51 : vector<2x8x8xbf16> to vector<2x1x8x8xbf16>
    tpu.vector_store %arg10[%c0_35, %c2_36, %c0_37, %c0_38], %54 {strides = array<i32>} : memref<2x4x8x8xbf16, #tpu.memory_space<vmem>>, vector<2x1x8x8xbf16>,
    %55 = vector.extract_strided_slice %8 {offsets = [0, 0, 80], sizes = [2, 8, 8], strides = [1, 1, 1]} : vector<2x8x96xf32> to vector<2x8x8xf32>
    %56 = arith.truncf %55 : vector<2x8x8xf32> to vector<2x8x8xbf16>
    %c0_39 = arith.constant 0 : index
    %c2_40 = arith.constant 2 : index
    %c0_41 = arith.constant 0 : index
    %c0_42 = arith.constant 0 : index
    %57 = vector.load %arg11[%c0_39, %c2_40, %c0_41, %c0_42] : memref<2x4x8x8xbf16, #tpu.memory_space<vmem>>, vector<2x1x8x8xbf16>
    %58 = vector.shape_cast %57 : vector<2x1x8x8xbf16> to vector<2x8x8xbf16>
    %59 = vector.shape_cast %56 : vector<2x8x8xbf16> to vector<2x1x8x8xbf16>
    tpu.vector_store %arg11[%c0_39, %c2_40, %c0_41, %c0_42], %59 {strides = array<i32>} : memref<2x4x8x8xbf16, #tpu.memory_space<vmem>>, vector<2x1x8x8xbf16>,
    %60 = vector.extract_strided_slice %8 {offsets = [0, 0, 24], sizes = [2, 8, 8], strides = [1, 1, 1]} : vector<2x8x96xf32> to vector<2x8x8xf32>
    %cst_43 = arith.constant 0.353553385 : f32
    %61 = vector.broadcast %cst_43 : f32 to vector<2x8x8xf32>
    %62 = arith.mulf %60, %61 : vector<2x8x8xf32>
    %63 = arith.truncf %62 : vector<2x8x8xf32> to vector<2x8x8xbf16>
    %c0_44 = arith.constant 0 : index
    %c3 = arith.constant 3 : index
    %c0_45 = arith.constant 0 : index
    %c0_46 = arith.constant 0 : index
    %64 = vector.load %arg9[%c0_44, %c3, %c0_45, %c0_46] : memref<2x4x8x8xbf16, #tpu.memory_space<vmem>>, vector<2x1x8x8xbf16>
    %65 = vector.shape_cast %64 : vector<2x1x8x8xbf16> to vector<2x8x8xbf16>
    %66 = vector.shape_cast %63 : vector<2x8x8xbf16> to vector<2x1x8x8xbf16>
    tpu.vector_store %arg9[%c0_44, %c3, %c0_45, %c0_46], %66 {strides = array<i32>} : memref<2x4x8x8xbf16, #tpu.memory_space<vmem>>, vector<2x1x8x8xbf16>,
    %67 = vector.extract_strided_slice %8 {offsets = [0, 0, 56], sizes = [2, 8, 8], strides = [1, 1, 1]} : vector<2x8x96xf32> to vector<2x8x8xf32>
    %68 = arith.truncf %67 : vector<2x8x8xf32> to vector<2x8x8xbf16>
    %c0_47 = arith.constant 0 : index
    %c3_48 = arith.constant 3 : index
    %c0_49 = arith.constant 0 : index
    %c0_50 = arith.constant 0 : index
    %69 = vector.load %arg10[%c0_47, %c3_48, %c0_49, %c0_50] : memref<2x4x8x8xbf16, #tpu.memory_space<vmem>>, vector<2x1x8x8xbf16>
    %70 = vector.shape_cast %69 : vector<2x1x8x8xbf16> to vector<2x8x8xbf16>
    %71 = vector.shape_cast %68 : vector<2x8x8xbf16> to vector<2x1x8x8xbf16>
    tpu.vector_store %arg10[%c0_47, %c3_48, %c0_49, %c0_50], %71 {strides = array<i32>} : memref<2x4x8x8xbf16, #tpu.memory_space<vmem>>, vector<2x1x8x8xbf16>,
    %72 = vector.extract_strided_slice %8 {offsets = [0, 0, 88], sizes = [2, 8, 8], strides = [1, 1, 1]} : vector<2x8x96xf32> to vector<2x8x8xf32>
    %73 = arith.truncf %72 : vector<2x8x8xf32> to vector<2x8x8xbf16>
    %c0_51 = arith.constant 0 : index
    %c3_52 = arith.constant 3 : index
    %c0_53 = arith.constant 0 : index
    %c0_54 = arith.constant 0 : index
    %74 = vector.load %arg11[%c0_51, %c3_52, %c0_53, %c0_54] : memref<2x4x8x8xbf16, #tpu.memory_space<vmem>>, vector<2x1x8x8xbf16>
    %75 = vector.shape_cast %74 : vector<2x1x8x8xbf16> to vector<2x8x8xbf16>
    %76 = vector.shape_cast %73 : vector<2x8x8xbf16> to vector<2x1x8x8xbf16>
    tpu.vector_store %arg11[%c0_51, %c3_52, %c0_53, %c0_54], %76 {strides = array<i32>} : memref<2x4x8x8xbf16, #tpu.memory_space<vmem>>, vector<2x1x8x8xbf16>,
    %c0_55 = arith.constant 0 : index
    %c0_56 = arith.constant 0 : index
    %c0_57 = arith.constant 0 : index
    %c0_58 = arith.constant 0 : index
    %77 = vector.load %arg9[%c0_55, %c0_56, %c0_57, %c0_58] : memref<2x4x8x8xbf16, #tpu.memory_space<vmem>>, vector<2x4x8x8xbf16>
    %78 = vector.shape_cast %77 : vector<2x4x8x8xbf16> to vector<8x8x8xbf16>
    %c0_59 = arith.constant 0 : index
    %c0_60 = arith.constant 0 : index
    %c0_61 = arith.constant 0 : index
    %c0_62 = arith.constant 0 : index
    %79 = vector.load %arg10[%c0_59, %c0_60, %c0_61, %c0_62] : memref<2x4x8x8xbf16, #tpu.memory_space<vmem>>, vector<2x4x8x8xbf16>
    %80 = vector.shape_cast %79 : vector<2x4x8x8xbf16> to vector<8x8x8xbf16>
    "tpu.trace_start"() <{level = 10 : i32, message = "bqd,bkd->bqk"}> : () -> ()
    %cst_63 = arith.constant dense<0.000000e+00> : vector<8x8x8xf32>
    %81 = tpu.matmul %78, %80, %cst_63 {dimension_numbers = #tpu.dot_dimension_numbers<[2], [2], [1], [1], [0, 0, 0, 1, 1, 1], [0], [0]>} : vector<8x8x8xbf16>, vector<8x8x8xbf16>, vector<8x8x8xf32> -> vector<8x8x8xf32>
    "tpu.trace_stop"() : () -> ()
    %82 = vector.shape_cast %81 : vector<8x8x8xf32> to vector<2x4x8x8xf32>
    %c0_64 = arith.constant 0 : index
    %c0_65 = arith.constant 0 : index
    %c0_66 = arith.constant 0 : index
    %83 = vector.load %arg2[%c0_64, %c0_65, %c0_66] : memref<2x1x8xbf16, #tpu.memory_space<vmem>>, vector<2x1x8xbf16>
    %84 = arith.extf %83 : vector<2x1x8xbf16> to vector<2x1x8xf32>
    %85 = vector.shape_cast %84 : vector<2x1x8xf32> to vector<2x1x1x8xf32>
    %cst_67 = arith.constant -9.99999984E+17 : f32
    %86 = vector.broadcast %cst_67 : f32 to vector<2x1x1x8xf32>
    %87 = arith.mulf %85, %86 : vector<2x1x1x8xf32>
    %88 = vector.broadcast %87 : vector<2x1x1x8xf32> to vector<2x4x8x8xf32>
    %89 = arith.addf %82, %88 : vector<2x4x8x8xf32>
    %cst_68 = arith.constant dense<0xFF800000> : vector<2x4x8xf32>
    %90 = vector.multi_reduction <maximumf>, %89, %cst_68 [3] : vector<2x4x8x8xf32> to vector<2x4x8xf32>
    %91 = vector.shape_cast %90 : vector<2x4x8xf32> to vector<2x4x8x1xf32>
    %92 = vector.broadcast %91 : vector<2x4x8x1xf32> to vector<2x4x8x8xf32>
    %93 = arith.subf %89, %92 : vector<2x4x8x8xf32>
    %94 = math.exp %93 : vector<2x4x8x8xf32>
    %cst_69 = arith.constant dense<0.000000e+00> : vector<2x4x8xf32>
    %95 = vector.multi_reduction <add>, %94, %cst_69 [3] : vector<2x4x8x8xf32> to vector<2x4x8xf32>
    %96 = vector.shape_cast %95 : vector<2x4x8xf32> to vector<2x4x8x1xf32>
    %97 = tpu.reciprocal %96 {approx = true} : vector<2x4x8x1xf32> -> vector<2x4x8x1xf32>
    %98 = vector.broadcast %97 : vector<2x4x8x1xf32> to vector<2x4x8x8xf32>
    %99 = arith.mulf %94, %98 : vector<2x4x8x8xf32>
    %c0_70 = arith.constant 0 : index
    %c0_71 = arith.constant 0 : index
    %c0_72 = arith.constant 0 : index
    %c0_73 = arith.constant 0 : index
    %100 = vector.load %arg8[%c0_70, %c0_71, %c0_72, %c0_73] : memref<2x4x8x8xf32, #tpu.memory_space<vmem>>, vector<2x4x8x8xf32>
    tpu.vector_store %arg8[%c0_70, %c0_71, %c0_72, %c0_73], %99 {strides = array<i32>} : memref<2x4x8x8xf32, #tpu.memory_space<vmem>>, vector<2x4x8x8xf32>,
    %cst_74 = arith.constant 1.000000e+00 : f32
    %101 = vector.broadcast %cst_74 : f32 to vector<2x1x1x8xf32>
    %102 = arith.subf %101, %85 : vector<2x1x1x8xf32>
    %103 = vector.broadcast %102 : vector<2x1x1x8xf32> to vector<2x4x8x8xf32>
    %104 = arith.mulf %99, %103 : vector<2x4x8x8xf32>
    %105 = vector.shape_cast %104 : vector<2x4x8x8xf32> to vector<8x8x8xf32>
    %106 = arith.truncf %105 : vector<8x8x8xf32> to vector<8x8x8xbf16>
    %c0_75 = arith.constant 0 : index
    %c0_76 = arith.constant 0 : index
    %c0_77 = arith.constant 0 : index
    %c0_78 = arith.constant 0 : index
    %107 = vector.load %arg11[%c0_75, %c0_76, %c0_77, %c0_78] : memref<2x4x8x8xbf16, #tpu.memory_space<vmem>>, vector<2x4x8x8xbf16>
    %108 = vector.shape_cast %107 : vector<2x4x8x8xbf16> to vector<8x8x8xbf16>
    "tpu.trace_start"() <{level = 10 : i32, message = "bqk,bkd->bqd"}> : () -> ()
    %cst_79 = arith.constant dense<0.000000e+00> : vector<8x8x8xf32>
    %109 = tpu.matmul %106, %108, %cst_79 {dimension_numbers = #tpu.dot_dimension_numbers<[2], [1], [1], [2], [0, 0, 0, 1, 1, 2], [0], [0]>} : vector<8x8x8xbf16>, vector<8x8x8xbf16>, vector<8x8x8xf32> -> vector<8x8x8xf32>
    "tpu.trace_stop"() : () -> ()
    %110 = vector.shape_cast %109 : vector<8x8x8xf32> to vector<2x4x8x8xf32>
    %111 = vector.extract_strided_slice %110 {offsets = [0, 0, 0, 0], sizes = [2, 1, 8, 8], strides = [1, 1, 1, 1]} : vector<2x4x8x8xf32> to vector<2x1x8x8xf32>
    %112 = vector.shape_cast %111 : vector<2x1x8x8xf32> to vector<2x8x8xf32>
    %113 = arith.truncf %112 : vector<2x8x8xf32> to vector<2x8x8xbf16>
    %c0_80 = arith.constant 0 : index
    %c0_81 = arith.constant 0 : index
    %c0_82 = arith.constant 0 : index
    %114 = vector.load %arg12[%c0_80, %c0_81, %c0_82] : memref<2x8x32xbf16, #tpu.memory_space<vmem>>, vector<2x8x8xbf16>
    tpu.vector_store %arg12[%c0_80, %c0_81, %c0_82], %113 {strides = array<i32>} : memref<2x8x32xbf16, #tpu.memory_space<vmem>>, vector<2x8x8xbf16>,
    %115 = vector.extract_strided_slice %110 {offsets = [0, 1, 0, 0], sizes = [2, 1, 8, 8], strides = [1, 1, 1, 1]} : vector<2x4x8x8xf32> to vector<2x1x8x8xf32>
    %116 = vector.shape_cast %115 : vector<2x1x8x8xf32> to vector<2x8x8xf32>
    %117 = arith.truncf %116 : vector<2x8x8xf32> to vector<2x8x8xbf16>
    %c0_83 = arith.constant 0 : index
    %c0_84 = arith.constant 0 : index
    %c8 = arith.constant 8 : index
    %118 = vector.load %arg12[%c0_83, %c0_84, %c8] : memref<2x8x32xbf16, #tpu.memory_space<vmem>>, vector<2x8x8xbf16>
    tpu.vector_store %arg12[%c0_83, %c0_84, %c8], %117 {strides = array<i32>} : memref<2x8x32xbf16, #tpu.memory_space<vmem>>, vector<2x8x8xbf16>,
    %119 = vector.extract_strided_slice %110 {offsets = [0, 2, 0, 0], sizes = [2, 1, 8, 8], strides = [1, 1, 1, 1]} : vector<2x4x8x8xf32> to vector<2x1x8x8xf32>
    %120 = vector.shape_cast %119 : vector<2x1x8x8xf32> to vector<2x8x8xf32>
    %121 = arith.truncf %120 : vector<2x8x8xf32> to vector<2x8x8xbf16>
    %c0_85 = arith.constant 0 : index
    %c0_86 = arith.constant 0 : index
    %c16 = arith.constant 16 : index
    %122 = vector.load %arg12[%c0_85, %c0_86, %c16] : memref<2x8x32xbf16, #tpu.memory_space<vmem>>, vector<2x8x8xbf16>
    tpu.vector_store %arg12[%c0_85, %c0_86, %c16], %121 {strides = array<i32>} : memref<2x8x32xbf16, #tpu.memory_space<vmem>>, vector<2x8x8xbf16>,
    %123 = vector.extract_strided_slice %110 {offsets = [0, 3, 0, 0], sizes = [2, 1, 8, 8], strides = [1, 1, 1, 1]} : vector<2x4x8x8xf32> to vector<2x1x8x8xf32>
    %124 = vector.shape_cast %123 : vector<2x1x8x8xf32> to vector<2x8x8xf32>
    %125 = arith.truncf %124 : vector<2x8x8xf32> to vector<2x8x8xbf16>
    %c0_87 = arith.constant 0 : index
    %c0_88 = arith.constant 0 : index
    %c24 = arith.constant 24 : index
    %126 = vector.load %arg12[%c0_87, %c0_88, %c24] : memref<2x8x32xbf16, #tpu.memory_space<vmem>>, vector<2x8x8xbf16>
    tpu.vector_store %arg12[%c0_87, %c0_88, %c24], %125 {strides = array<i32>} : memref<2x8x32xbf16, #tpu.memory_space<vmem>>, vector<2x8x8xbf16>,
    %c0_89 = arith.constant 0 : index
    %c0_90 = arith.constant 0 : index
    %c0_91 = arith.constant 0 : index
    %127 = vector.load %arg12[%c0_89, %c0_90, %c0_91] : memref<2x8x32xbf16, #tpu.memory_space<vmem>>, vector<2x8x32xbf16>
    %128 = vector.shape_cast %127 : vector<2x8x32xbf16> to vector<16x32xbf16>
    %c0_92 = arith.constant 0 : index
    %c0_93 = arith.constant 0 : index
    %129 = vector.load %arg5[%c0_92, %c0_93] : memref<32x32xbf16, #tpu.memory_space<vmem>>, vector<32x32xbf16>
    %cst_94 = arith.constant dense<0.000000e+00> : vector<16x32xf32>
    %130 = tpu.matmul %128, %129, %cst_94 {dimension_numbers = #tpu.dot_dimension_numbers<[1], [0], [0], [1], [0, 0, 1, 1], [], []>} : vector<16x32xbf16>, vector<32x32xbf16>, vector<16x32xf32> -> vector<16x32xf32>
    %c0_95 = arith.constant 0 : index
    %c0_96 = arith.constant 0 : index
    %131 = vector.load %arg6[%c0_95, %c0_96] : memref<1x32xf32, #tpu.memory_space<vmem>>, vector<1x32xf32>
    %132 = vector.broadcast %131 : vector<1x32xf32> to vector<16x32xf32>
    %133 = arith.addf %130, %132 : vector<16x32xf32>
    %134 = arith.addf %133, %1 : vector<16x32xf32>
    %135 = vector.shape_cast %134 : vector<16x32xf32> to vector<2x8x32xf32>
    %c0_97 = arith.constant 0 : index
    %c0_98 = arith.constant 0 : index
    %c0_99 = arith.constant 0 : index
    %136 = vector.load %arg7[%c0_97, %c0_98, %c0_99] : memref<2x8x32xf32, #tpu.memory_space<vmem>>, vector<2x8x32xf32>
    tpu.vector_store %arg7[%c0_97, %c0_98, %c0_99], %135 {strides = array<i32>} : memref<2x8x32xf32, #tpu.memory_space<vmem>>, vector<2x8x32xf32>,
    return
  }
  func.func @transform_0(%arg0: i32) -> (i32, i32, i32) {
    %c0_i32 = arith.constant 0 : i32
    %c0_i32_0 = arith.constant 0 : i32
    %c0_i32_1 = arith.constant 0 : i32
    return %arg0, %c0_i32, %c0_i32_0 : i32, i32, i32
  }
  func.func @transform_1(%arg0: i32) -> (i32, i32, i32) {
    %c0_i32 = arith.constant 0 : i32
    %c0_i32_0 = arith.constant 0 : i32
    %c0_i32_1 = arith.constant 0 : i32
    return %arg0, %c0_i32, %c0_i32_0 : i32, i32, i32
  }
  func.func @transform_2(%arg0: i32) -> (i32, i32) {
    %c0_i32 = arith.constant 0 : i32
    %c0_i32_0 = arith.constant 0 : i32
    %c0_i32_1 = arith.constant 0 : i32
    return %c0_i32, %c0_i32_0 : i32, i32
  }
  func.func @transform_3(%arg0: i32) -> (i32, i32) {
    %c0_i32 = arith.constant 0 : i32
    %c0_i32_0 = arith.constant 0 : i32
    %c0_i32_1 = arith.constant 0 : i32
    return %c0_i32, %c0_i32_0 : i32, i32
  }
  func.func @transform_4(%arg0: i32) -> (i32, i32) {
    %c0_i32 = arith.constant 0 : i32
    %c0_i32_0 = arith.constant 0 : i32
    %c0_i32_1 = arith.constant 0 : i32
    return %c0_i32, %c0_i32_0 : i32, i32
  }
  func.func @transform_5(%arg0: i32) -> (i32, i32) {
    %c0_i32 = arith.constant 0 : i32
    %c0_i32_0 = arith.constant 0 : i32
    %c0_i32_1 = arith.constant 0 : i32
    return %c0_i32, %c0_i32_0 : i32, i32
  }
  func.func @transform_6(%arg0: i32) -> (i32, i32, i32) {
    %c0_i32 = arith.constant 0 : i32
    %c0_i32_0 = arith.constant 0 : i32
    %c0_i32_1 = arith.constant 0 : i32
    return %arg0, %c0_i32, %c0_i32_0 : i32, i32, i32
  }
  func.func @transform_7(%arg0: i32) -> (i32, i32, i32, i32) {
    %c0_i32 = arith.constant 0 : i32
    %c0_i32_0 = arith.constant 0 : i32
    %c0_i32_1 = arith.constant 0 : i32
    %c0_i32_2 = arith.constant 0 : i32
    return %arg0, %c0_i32, %c0_i32_0, %c0_i32_1 : i32, i32, i32, i32
  }
}

</mosaic_0001>

<bundles_post_ra>
// kernel: tpu_custom_call.1
= control target key start
LH: loop header
LB: loop body
LE: loop exit
PB: predicated region body
PF: predicated region fallthrough
CT: control target
= control target key end

     0   :  { %13 = vsyncpa [#allocation7], 0  ;;  %s1330_s0 = inlined_call_operand.hbm [shape: f32[2,8,32], index: 0, kind: input, shape index: {}]   ;;  %s1331_s1 = inlined_call_operand.vmem [shape: bf16[2,1,8], index: 1, kind: input, shape index: {}]   ;;  %s1332_s2 = inlined_call_operand.hbm [shape: bf16[32,96], index: 2, kind: input, shape index: {}]   ;;  %s1333_s3 = inlined_call_operand.vmem [shape: f32[1,96], index: 3, kind: input, shape index: {}]   ;;  %s1334_s4 = inlined_call_operand.hbm [shape: bf16[32,32], index: 4, kind: input, shape index: {}]   ;;  %s1335_s5 = inlined_call_operand.vmem [shape: f32[1,32], index: 5, kind: input, shape index: {}]   ;;  %s1336_s6 = inlined_call_operand.hbm [shape: f32[2,8,32], index: 6, kind: output, shape index: {0}]   ;;  %s1337_s7 = inlined_call_operand.hbm [shape: f32[2,4,8,8], index: 7, kind: output, shape index: {1}]  }
   0x1   :  { %14 = vsyncpa [#allocation10], 0 }
   0x2   :  { %15 = vsyncpa [#allocation8], 0  ;;  %s36_s26 = sshll.u32 %s1332_s2, 4  ;;  %s37_s26 = int_to_ptr.hbm [resolvable:$true] %s36_s26 }
   0x3   :  { %16 = vsyncpa [#allocation14], 0  ;;  %s1043_s27 = smov [#allocation9]   ;;  %s21_s8 = sshll.u32 %s1330_s0, 4  ;;  %s22_s8 = int_to_ptr.hbm [resolvable:$true] %s21_s8 }
   0x4   :  { %s38_s28 = sshll.u32 %s1043_s27, 4  ;;  %s1044_s9 = smov 64   ;;  %s39_s28 = int_to_ptr.vmem [resolvable:$true] %s38_s28 }
   0x5   :  { %s1045_s10 = smov 4   ;;  %s1046_s11 = smov [#allocation6]  }
   0x6   :  { %44 = dma.hbm_to_vmem [thread:$0]  %s37_s26, 256, %s39_s28, [#allocation10], %s1044_s9, %s1044_s9, %s1045_s10  }
   0x7   :  { %s23_s12 = sshll.u32 %s1046_s11, 4  ;;  %s1047_s13 = smov 128   ;;  %s24_s12 = int_to_ptr.vmem [resolvable:$true] %s23_s12 }
   0x8   :  { %s1048_s2 = smov 8   ;;  %s51_s16 = sshll.u32 %s1334_s4, 4  ;;  %s52_s16 = int_to_ptr.hbm [resolvable:$true] %s51_s16 }
   0x9   :  { %29 = dma.hbm_to_vmem [thread:$0]  %s22_s8, 256, %s24_s12, [#allocation7], %s1047_s13, %s1047_s13, %s1048_s2  }
   0xa   :  { %s1049_s0 = smov [#allocation11]  }
   0xb   :  { %s53_s17 = sshll.u32 %s1049_s0, 4  ;;  %s54_s17 = int_to_ptr.vmem [resolvable:$true] %s53_s17 }
   0xc   :  { %59 = dma.hbm_to_vmem [thread:$0]  %s52_s16, 256, %s54_s17, [#allocation10], %s1044_s9, %s1044_s9, %s1045_s10  }
   0xd   :  { %1035 = dma.done.wait [#allocation7], 256  }
   0xe   :  { %1036 = vsyncadd [#allocation7], 4294967040 }
   0xf   :  { %1037 = dma.done.wait [#allocation10], 512  }
  0x10   :  { %1038 = vsyncadd [#allocation10], 4294966784  ;;  %v856_v0 = vld [vmem:[#allocation9 + $0x8] sm:$0xff]  ;;  %v855_v1 = vld [vmem:[#allocation9] sm:$0xff]  ;;  %vm98_vm0 = vcmask 261120   ;;  %vm120_vm1 = vcmask 60416  }
  0x11   :  { %108 = vmatpush.bf16.msra.mxu0 %v856_v0  ;;  %v1120_v2 = vld [vmem:[#allocation6] sm:$0xff]  ;;  %v1122_v3 = vld [vmem:[#allocation6 + $0x8] sm:$0xff]  ;;  %v881_v5 = vld [vmem:[%s1333_s3] ss:$0 sm:$0xff]  ;;  %s1050_s19 = smov 72   ;;  %s1051_s20 = smov 88  }
  0x12   :  { %v77_v4 = vpack.c.bf16 %v1122_v3, %v1120_v2  ;;  %s1052_s21 = smov 120   ;;  %s1053_s3 = smov 80   ;;  %vm242_vm2 = vcmask 64512   ;;  %v1177_v54 = vld [vmem:[%s1331_s1] sm:$0x1]  ;;  %vm538_vm3 = vcmask 1043456  }
  0x13   :  { %s1054_s22 = smov 112   ;;  %s1055_s23 = smov 104   ;;  %v397_v55 = vunpack.c.l.bf16 %v1177_v54  ;;  %v1185_v60 = vld [vmem:[%s1331_s1 + $0x1] sm:$0x1]  ;;  %vm702_vm4 = vcmask 126016   ;;  %vm715_vm5 = vcmask 191616  }
  0x14   :  { %s1056_s24 = smov 96   ;;  %v398_v0 = vunpack.c.l.bf16 %v1185_v60  ;;  %s1057_s1 = smov 56   ;;  %vm728_vm6 = vcmask 257216  }
  0x15   :  { %109 = vmatpush.bf16.msra.mxu0 %v855_v1  ;;  %v399_v56 = vmul.f32 -1e+18, %v397_v55  ;;  %s1058_s29 = smov 48   ;;  %s1059_s30 = smov 40  }
  0x16   :  { %s1060_s8 = smov 16   ;;  %s1062_s10 = smov [#allocation13]  }
  0x17   :  { %v401_v57 = vperm.slane %v399_v56, 0  ;;  %s796_s11 = sshll.u32 %s1062_s10, 4  ;;  %s798_s15 = sshll.u32 %s1337_s7, 4  ;;  %s797_s11 = int_to_ptr.vmem [resolvable:$true] %s796_s11  ;;  %s799_s15 = int_to_ptr.hbm [resolvable:$true] %s798_s15 }
  0x18   :  { %825 = vmatmul.msk.bf16.vlgmr.msra.gmra.mxu0 %vm98_vm0, %v77_v4  ;;  %s1063_s17 = smov [#allocation12]  }
  0x19   :  { %s783_s4 = sshll.u32 %s1063_s17, 4  ;;  %s784_s4 = int_to_ptr.vmem [resolvable:$true] %s783_s4 }
  0x95   :  { %v111_v6 = vpop.f32.mrf.mxu0 }
  0x96   :  { %v112_v7 = vadd.f32 %v881_v5, %v111_v6 }
  0x98   :  { %v116_v8 = vmul.f32 0.35355338, %v112_v7  ;;  %v1130_v9 = vpack.c.bf16 %v112_v7, %v112_v7  ;;  %v400_v7 = vmul.f32 -1e+18, %v398_v0 }
  0x9a   :  { %v118_v10 = vpack.c.bf16 %v116_v8, %v116_v8  ;;  %208 = vrot.lane.b32.xlu2 %v1130_v9, %s1050_s19  ;;  %154 = vrot.lane.b32.xlu0 %v1130_v9, %s1051_s20 }
  0x9c   :  { %121 = vst.msk [vmem:[#allocation2] sm:$0xf] %vm120_vm1, %v118_v10  ;;  %145 = vrot.lane.b32.xlu1 %v118_v10, %s1052_s21 }
  0x9d   :  { %v113_v11 = vpop.f32.mrf.mxu0 }
  0x9e   :  { %v114_v12 = vadd.f32 %v881_v5, %v113_v11  ;;  %v402_v11 = vperm.slane %v400_v7, 0 }
  0xa0   :  { %v117_v13 = vmul.f32 0.35355338, %v114_v12  ;;  %v1135_v14 = vpack.c.bf16 %v114_v12, %v114_v12 }
  0xa2   :  { %v119_v15 = vpack.c.bf16 %v117_v13, %v117_v13  ;;  %156 = vrot.lane.b32.xlu2 %v1135_v14, %s1051_s20  ;;  %181 = vrot.lane.b32.xlu0 %v1130_v9, %s1053_s3 }
  0xa3   :  { %v226_v52 = vld [vmem:[#allocation2] sm:$0xf] }
  0xa4   :  { %122 = vst.msk [vmem:[#allocation2 + $0x10] sm:$0xf] %vm120_vm1, %v119_v15  ;;  %172 = vrot.lane.b32.xlu1 %v118_v10, %s1054_s22 }
  0xaa   :  { %147 = vrot.lane.b32.xlu2 %v119_v15, %s1052_s21  ;;  %183 = vrot.lane.b32.xlu0 %v1135_v14, %s1053_s3 }
  0xab   :  { %v230_v53 = vld [vmem:[#allocation2 + $0x10] sm:$0xf] }
  0xac   :  { %199 = vrot.lane.b32.xlu1 %v118_v10, %s1055_s23 }
  0xb2   :  { %201 = vrot.lane.b32.xlu2 %v119_v15, %s1055_s23  ;;  %174 = vrot.lane.b32.xlu0 %v119_v15, %s1054_s22 }
  0xb4   :  { %210 = vrot.lane.b32.xlu1 %v1135_v14, %s1050_s19  ;;  %s785_s19 = sshll.u32 %s1336_s6, 4  ;;  %s786_s19 = int_to_ptr.hbm [resolvable:$true] %s785_s19 }
  0xba   :  { %127 = vrot.lane.b32.xlu0 %v1130_v9, %s1056_s24 }
  0xbc   :  { %129 = vrot.lane.b32.xlu1 %v1135_v14, %s1056_s24 }
  0xf4   :  { %v209_v16 = vpop.permute.xlu2 %208 }
  0xf5   :  { %215 = vst.msk [vmem:[#allocation3 + $0xc] sm:$0xf] %vm120_vm1, %v209_v16 }
  0xfc   :  { %v157_v17 = vpop.permute.xlu2 %156  ;;  %v237_v18 = vld [vmem:[#allocation3 + $0xc] sm:$0xf] }
  0xfd   :  { %162 = vst.msk [vmem:[#allocation3 + $0x14] sm:$0xf] %vm120_vm1, %v157_v17  ;;  %v304_v19 = vsel %vm242_vm2, %v237_v18, 0 }
  0xfe   :  { %313 = vmatpush.bf16.xpose.msrb.mxu0 %v304_v19 }
 0x104   :  { %v148_v20 = vpop.permute.xlu2 %147  ;;  %v239_v25 = vld [vmem:[#allocation3 + $0x14] sm:$0xf] }
 0x105   :  { %153 = vst.msk [vmem:[#allocation2 + $0x14] sm:$0xf] %vm120_vm1, %v148_v20  ;;  %v342_v29 = vsel %vm242_vm2, %v239_v25, 0 }
 0x10c   :  { %v202_v21 = vpop.permute.xlu2 %201  ;;  %v155_v22 = vpop.permute.xlu0 %154  ;;  %v231_v42 = vld [vmem:[#allocation2 + $0x14] sm:$0xf] }
 0x10d   :  { %207 = vst.msk [vmem:[#allocation2 + $0x1c] sm:$0xf] %vm120_vm1, %v202_v21 }
 0x10e   :  { %161 = vst.msk [vmem:[#allocation3 + $0x4] sm:$0xf] %vm120_vm1, %v155_v22  ;;  %v146_v23 = vpop.permute.xlu1 %145 }
 0x10f   :  { %152 = vst.msk [vmem:[#allocation2 + $0x4] sm:$0xf] %vm120_vm1, %v146_v23 }
 0x114   :  { %v182_v24 = vpop.permute.xlu0 %181  ;;  %v233_v49 = vld [vmem:[#allocation2 + $0x1c] sm:$0xf] }
 0x115   :  { %188 = vst.msk [vmem:[#allocation3 + $0x8] sm:$0xf] %vm120_vm1, %v182_v24  ;;  %v235_v26 = vld [vmem:[#allocation3 + $0x4] sm:$0xf] }
 0x116   :  { %v266_v27 = vsel %vm242_vm2, %v235_v26, 0  ;;  %v173_v28 = vpop.permute.xlu1 %172  ;;  %v227_v32 = vld [vmem:[#allocation2 + $0x4] sm:$0xf] }
 0x117   :  { %275 = vmatpush.bf16.xpose.msra.mxu2 %v266_v27  ;;  %179 = vst.msk [vmem:[#allocation2 + $0x8] sm:$0xf] %vm120_vm1, %v173_v28 }
 0x11c   :  { %v184_v30 = vpop.permute.xlu0 %183  ;;  %v236_v31 = vld [vmem:[#allocation3 + $0x8] sm:$0xf] }
 0x11d   :  { %189 = vst.msk [vmem:[#allocation3 + $0x18] sm:$0xf] %vm120_vm1, %v184_v30  ;;  %v285_v33 = vsel %vm242_vm2, %v236_v31, 0 }
 0x11e   :  { %827 = vmatmul.msk.bf16.vlgmr.msra.gmra.mxu2 %vm242_vm2, %v227_v32  ;;  %294 = vmatpush.bf16.xpose.msra.mxu3 %v285_v33  ;;  %v200_v34 = vpop.permute.xlu1 %199  ;;  %v228_v36 = vld [vmem:[#allocation2 + $0x8] sm:$0xf] }
 0x11f   :  { %351 = vmatpush.bf16.xpose.msrb.mxu2 %v342_v29  ;;  %206 = vst.msk [vmem:[#allocation2 + $0xc] sm:$0xf] %vm120_vm1, %v200_v34 }
 0x124   :  { %v175_v35 = vpop.permute.xlu0 %174  ;;  %v240_v37 = vld [vmem:[#allocation3 + $0x18] sm:$0xf] }
 0x125   :  { %180 = vst.msk [vmem:[#allocation2 + $0x18] sm:$0xf] %vm120_vm1, %v175_v35  ;;  %828 = vmatmul.msk.bf16.vlgmr.msra.gmra.mxu3 %vm242_vm2, %v228_v36  ;;  %v361_v38 = vsel %vm242_vm2, %v240_v37, 0 }
 0x126   :  { %370 = vmatpush.bf16.xpose.msrb.mxu3 %v361_v38  ;;  %v211_v39 = vpop.permute.xlu1 %210  ;;  %v229_v40 = vld [vmem:[#allocation2 + $0xc] sm:$0xf] }
 0x127   :  { %216 = vst.msk [vmem:[#allocation3 + $0x1c] sm:$0xf] %vm120_vm1, %v211_v39  ;;  %829 = vmatmul.msk.bf16.vlgmr.msrb.gmra.mxu0 %vm242_vm2, %v229_v40 }
 0x12c   :  { %v128_v41 = vpop.permute.xlu0 %127  ;;  %v232_v46 = vld [vmem:[#allocation2 + $0x18] sm:$0xf] }
 0x12d   :  { %133 = vst.msk [vmem:[#allocation3] sm:$0xf] %vm120_vm1, %v128_v41 }
 0x12e   :  { %831 = vmatmul.msk.bf16.vlgmr.msrb.gmra.mxu2 %vm242_vm2, %v231_v42  ;;  %v130_v43 = vpop.permute.xlu1 %129  ;;  %v241_v44 = vld [vmem:[#allocation3 + $0x1c] sm:$0xf] }
 0x12f   :  { %134 = vst.msk [vmem:[#allocation3 + $0x10] sm:$0xf] %vm120_vm1, %v130_v43  ;;  %v380_v45 = vsel %vm242_vm2, %v241_v44, 0 }
 0x130   :  { %389 = vmatpush.bf16.xpose.msra.mxu0 %v380_v45 }
 0x134   :  { %v234_v47 = vld [vmem:[#allocation3] sm:$0xf] }
 0x135   :  { %832 = vmatmul.msk.bf16.vlgmr.msrb.gmra.mxu3 %vm242_vm2, %v232_v46  ;;  %v247_v48 = vsel %vm242_vm2, %v234_v47, 0 }
 0x136   :  { %256 = vmatpush.bf16.xpose.msra.mxu1 %v247_v48  ;;  %v238_v50 = vld [vmem:[#allocation3 + $0x10] sm:$0xf] }
 0x137   :  { %833 = vmatmul.msk.bf16.vlgmr.msra.gmra.mxu0 %vm242_vm2, %v233_v49  ;;  %v323_v51 = vsel %vm242_vm2, %v238_v50, 0 }
 0x13d   :  { %826 = vmatmul.msk.bf16.vlgmr.msra.gmra.mxu1 %vm242_vm2, %v226_v52 }
 0x13e   :  { %332 = vmatpush.bf16.xpose.msrb.mxu1 %v323_v51 }
 0x14d   :  { %830 = vmatmul.msk.bf16.vlgmr.msrb.gmra.mxu1 %vm242_vm2, %v230_v53 }
 0x1a1   :  { %v277_v58 = vpop.f32.mrf.mxu2 }
 0x1a2   :  { %v404_v59 = vadd.f32 %v401_v57, %v277_v58 }
 0x1a4   :  { %v414_v61 = vsel %vm242_vm2, %v404_v59, -inf  ;;  %v315_v62 = vpop.f32.mrf.mxu0 }
 0x1a5   :  { %415 = vmax.xlane.f32.xlu2 %v414_v61  ;;  %v406_v63 = vadd.f32 %v401_v57, %v315_v62 }
 0x1a7   :  { %v420_v1 = vsel %vm242_vm2, %v406_v63, -inf }
 0x1a8   :  { %v296_v4 = vpop.f32.mrf.mxu3  ;;  %421 = vmax.xlane.f32.xlu1 %v420_v1 }
 0x1a9   :  { %v279_v5 = vpop.f32.mrf.mxu2  ;;  %v405_v6 = vadd.f32 %v401_v57, %v296_v4 }
 0x1ab   :  { %v417_v8 = vsel %vm242_vm2, %v405_v6, -inf }
 0x1ac   :  { %418 = vmax.xlane.f32.xlu0 %v417_v8  ;;  %v317_v10 = vpop.f32.mrf.mxu0 }
 0x1b0   :  { %v298_v12 = vpop.f32.mrf.mxu3 }
 0x1b1   :  { %v353_v13 = vpop.f32.mrf.mxu2 }
 0x1b2   :  { %v408_v15 = vadd.f32 %v402_v11, %v353_v13 }
 0x1b4   :  { %v426_v16 = vsel %vm242_vm2, %v408_v15, -inf  ;;  %v391_v17 = vpop.f32.mrf.mxu0 }
 0x1b5   :  { %427 = vmax.xlane.f32.xlu2 %v426_v16  ;;  %v1194_v18 = vadd.f32 %v402_v11, %v391_v17 }
 0x1b7   :  { %v432_v19 = vsel %vm242_vm2, %v1194_v18, -inf }
 0x1b8   :  { %v372_v20 = vpop.f32.mrf.mxu3  ;;  %433 = vmax.xlane.f32.xlu0 %v432_v19 }
 0x1b9   :  { %v355_v21 = vpop.f32.mrf.mxu2  ;;  %v1198_v22 = vadd.f32 %v402_v11, %v372_v20 }
 0x1ba   :  { %v258_v23 = vpop.f32.mrf.mxu1 }
 0x1bb   :  { %v429_v24 = vsel %vm242_vm2, %v1198_v22, -inf  ;;  %v403_v32 = vadd.f32 %v401_v57, %v258_v23 }
 0x1bc   :  { %v393_v25 = vpop.f32.mrf.mxu0 }
 0x1bd   :  { %430 = vmax.xlane.f32.xlu2 %v429_v24  ;;  %v411_v33 = vsel %vm242_vm2, %v403_v32, -inf }
 0x1c0   :  { %v374_v26 = vpop.f32.mrf.mxu3 }
 0x1c1   :  { %163 = vrot.lane.b32.xlu1 %v1130_v9, %s1057_s1 }
 0x1c2   :  { %v260_v27 = vpop.f32.mrf.mxu1 }
 0x1ca   :  { %v334_v28 = vpop.f32.mrf.mxu1 }
 0x1cb   :  { %v1203_v29 = vadd.f32 %v402_v11, %v334_v28 }
 0x1cd   :  { %v423_v30 = vsel %vm242_vm2, %v1203_v29, -inf }
 0x1ce   :  { %424 = vmax.xlane.f32.xlu0 %v423_v30 }
 0x1d2   :  { %v336_v31 = vpop.f32.mrf.mxu1 }
 0x1d3   :  { %v507_v31 = vsub.f32 1.0, %v397_v55 }
 0x1d5   :  { %190 = vrot.lane.b32.xlu2 %v1130_v9, %s1058_s29 }
 0x1e2   :  { %217 = vrot.lane.b32.xlu0 %v1130_v9, %s1059_s30 }
 0x1ea   :  { %165 = vrot.lane.b32.xlu0 %v1135_v14, %s1057_s1 }
 0x1eb   :  { %412 = vmax.xlane.f32.xlu1 %v411_v33  ;;  %v1266_v33 = vperm.slane %v507_v31, 0 }
 0x218   :  { %v416_v34 = vpop.xlane.xlu2 %415 }
 0x219   :  { %v436_v35 = vsub.f32 %v404_v59, %v416_v34 }
 0x21b   :  { %v445_v36 = vmul.f32 1.442695, %v436_v35  ;;  %v422_v37 = vpop.xlane.xlu1 %421 }
 0x21c   :  { %v438_v38 = vsub.f32 %v406_v63, %v422_v37 }
 0x21d   :  { %883 = vpow2.f32 %v445_v36 }
 0x21e   :  { %v449_v39 = vmul.f32 1.442695, %v438_v38 }
 0x21f   :  { %v419_v40 = vpop.xlane.xlu0 %418 }
 0x220   :  { %885 = vpow2.f32 %v449_v39  ;;  %v437_v41 = vsub.f32 %v405_v6, %v419_v40 }
 0x222   :  { %v447_v42 = vmul.f32 1.442695, %v437_v41  ;;  %v508_v41 = vsub.f32 1.0, %v398_v0 }
 0x223   :  { %v1213_v43 = vpop.eup %883 }
 0x224   :  { %v462_v44 = vsel %vm242_vm2, %v1213_v43, 0.0  ;;  %887 = vpow2.f32 %v447_v42 }
 0x225   :  { %463 = vadd.xlane.f32.xlu2 %v462_v44  ;;  %v510_v44 = vperm.slane %v508_v41, 0 }
 0x226   :  { %v1217_v45 = vpop.eup %885 }
 0x227   :  { %v468_v46 = vsel %vm242_vm2, %v1217_v45, 0.0 }
 0x228   :  { %v428_v47 = vpop.xlane.xlu2 %427  ;;  %469 = vadd.xlane.f32.xlu0 %v468_v46 }
 0x229   :  { %v440_v48 = vsub.f32 %v408_v15, %v428_v47 }
 0x22a   :  { %v1221_v50 = vpop.eup %887 }
 0x22b   :  { %v453_v49 = vmul.f32 1.442695, %v440_v48  ;;  %v465_v51 = vsel %vm242_vm2, %v1221_v50, 0.0  ;;  %v434_v1 = vpop.xlane.xlu0 %433 }
 0x22c   :  { %v442_v6 = vsub.f32 %v1194_v18, %v434_v1 }
 0x22d   :  { %889 = vpow2.f32 %v453_v49 }
 0x22e   :  { %v457_v13 = vmul.f32 1.442695, %v442_v6 }
 0x230   :  { %v431_v52 = vpop.xlane.xlu2 %430  ;;  %466 = vadd.xlane.f32.xlu0 %v465_v51 }
 0x231   :  { %v441_v15 = vsub.f32 %v1198_v22, %v431_v52 }
 0x233   :  { %v1225_v53 = vpop.eup %889  ;;  %v164_v56 = vpop.permute.xlu1 %163  ;;  %v455_v19 = vmul.f32 1.442695, %v441_v15 }
 0x234   :  { %170 = vst.msk [vmem:[#allocation4 + $0x4] sm:$0xf] %vm120_vm1, %v164_v56  ;;  %v474_v57 = vsel %vm242_vm2, %v1225_v53, 0.0 }
 0x235   :  { %475 = vadd.xlane.f32.xlu1 %v474_v57 }
 0x238   :  { %v191_v58 = vpop.permute.xlu2 %190 }
 0x239   :  { %197 = vst.msk [vmem:[#allocation4 + $0x8] sm:$0xf] %vm120_vm1, %v191_v58 }
 0x23b   :  { %v528_v59 = vld [vmem:[#allocation4 + $0x4] sm:$0xf] }
 0x23c   :  { %v559_v61 = vsel %vm538_vm3, %v528_v59, 0 }
 0x23d   :  { %568 = vmatpush.bf16.msra.mxu2 %v559_v61 }
 0x240   :  { %v529_v62 = vld [vmem:[#allocation4 + $0x8] sm:$0xf] }
 0x241   :  { %v578_v63 = vsel %vm538_vm3, %v529_v62, 0  ;;  %v425_v4 = vpop.xlane.xlu0 %424 }
 0x242   :  { %587 = vmatpush.bf16.msra.mxu3 %v578_v63  ;;  %v439_v18 = vsub.f32 %v1203_v29, %v425_v4 }
 0x244   :  { %192 = vrot.lane.b32.xlu0 %v1135_v14, %s1058_s29  ;;  %v451_v24 = vmul.f32 1.442695, %v439_v18 }
 0x24e   :  { %219 = vrot.lane.b32.xlu1 %v1135_v14, %s1059_s30 }
 0x254   :  { %v218_v5 = vpop.permute.xlu0 %217 }
 0x255   :  { %224 = vst.msk [vmem:[#allocation4 + $0xc] sm:$0xf] %vm120_vm1, %v218_v5 }
 0x25c   :  { %v166_v7 = vpop.permute.xlu0 %165  ;;  %v530_v8 = vld [vmem:[#allocation4 + $0xc] sm:$0xf] }
 0x25d   :  { %171 = vst.msk [vmem:[#allocation4 + $0x14] sm:$0xf] %vm120_vm1, %v166_v7  ;;  %v597_v10 = vsel %vm538_vm3, %v530_v8, 0 }
 0x25e   :  { %v413_v11 = vpop.xlane.xlu1 %412  ;;  %606 = vmatpush.bf16.msrb.mxu0 %v597_v10 }
 0x25f   :  { %v435_v12 = vsub.f32 %v403_v32, %v413_v11 }
 0x261   :  { %v443_v16 = vmul.f32 1.442695, %v435_v12 }
 0x263   :  { %891 = vpow2.f32 %v443_v16 }
 0x264   :  { %893 = vpow2.f32 %v457_v13  ;;  %v532_v17 = vld [vmem:[#allocation4 + $0x14] sm:$0xf] }
 0x265   :  { %v635_v20 = vsel %vm538_vm3, %v532_v17, 0  ;;  %895 = vpow2.f32 %v455_v19 }
 0x266   :  { %644 = vmatpush.bf16.msrb.mxu2 %v635_v20  ;;  %897 = vpow2.f32 %v451_v24 }
 0x269   :  { %v1244_v21 = vpop.eup %891 }
 0x26a   :  { %v1246_v23 = vpop.eup %893  ;;  %v459_v25 = vsel %vm242_vm2, %v1244_v21, 0.0 }
 0x26b   :  { %460 = vadd.xlane.f32.xlu2 %v459_v25  ;;  %v480_v22 = vsel %vm242_vm2, %v1246_v23, 0.0  ;;  %v1252_v26 = vpop.eup %895 }
 0x26c   :  { %v477_v27 = vsel %vm242_vm2, %v1252_v26, 0.0  ;;  %v1256_v28 = vpop.eup %897 }
 0x26d   :  { %v471_v29 = vsel %vm242_vm2, %v1256_v28, 0.0 }
 0x26e   :  { %481 = vadd.xlane.f32.xlu0 %v480_v22 }
 0x273   :  { %478 = vadd.xlane.f32.xlu2 %v477_v27 }
 0x278   :  { %472 = vadd.xlane.f32.xlu1 %v471_v29 }
 0x282   :  { %137 = vrot.lane.b32.xlu0 %v1135_v14, %s1044_s9 }
 0x28b   :  { %135 = vrot.lane.b32.xlu2 %v1130_v9, %s1044_s9  ;;  %s1061_s9 = smov 24  }
 0x298   :  { %v464_v30 = vpop.xlane.xlu2 %463 }
 0x299   :  { %899 = vrcp.f32 %v464_v30 }
 0x29b   :  { %v470_v32 = vpop.xlane.xlu0 %469 }
 0x29c   :  { %901 = vrcp.f32 %v470_v32 }
 0x29f   :  { %v900_v34 = vpop.eup %899 }
 0x2a0   :  { %v492_v35 = vmul.f32 %v900_v34, %v1213_v43 }
 0x2a2   :  { %v902_v36 = vpop.eup %901  ;;  %500 = vst.msk [vmem:[#allocation13 + $0x8] sm:$0xff] %vm242_vm2, %v492_v35  ;;  %v512_v14 = vmul.f32 %v1266_v33, %v492_v35 }
 0x2a3   :  { %v494_v37 = vmul.f32 %v902_v36, %v1217_v45  ;;  %v467_v9 = vpop.xlane.xlu0 %466 }
 0x2a4   :  { %v520_v38 = vpack.c.bf16 %v512_v14, %v512_v14  ;;  %903 = vrcp.f32 %v467_v9 }
 0x2a5   :  { %502 = vst.msk [vmem:[#allocation13 + $0x18] sm:$0xff] %vm242_vm2, %v494_v37  ;;  %v514_v54 = vmul.f32 %v1266_v33, %v494_v37 }
 0x2a6   :  { %835 = vmatmul.msk.bf16.vlgmr.msra.gmra.mxu2 %vm242_vm2, %v520_v38 }
 0x2a7   :  { %v522_v55 = vpack.c.bf16 %v514_v54, %v514_v54 }
 0x2a8   :  { %v476_v39 = vpop.xlane.xlu1 %475 }
 0x2a9   :  { %905 = vrcp.f32 %v476_v39  ;;  %837 = vmatmul.msk.bf16.vlgmr.msrb.gmra.mxu0 %vm242_vm2, %v522_v55 }
 0x2aa   :  { %v904_v40 = vpop.eup %903 }
 0x2ab   :  { %v493_v42 = vmul.f32 %v904_v40, %v1221_v50 }
 0x2ad   :  { %501 = vst.msk [vmem:[#allocation13 + $0x10] sm:$0xff] %vm242_vm2, %v493_v42  ;;  %v513_v43 = vmul.f32 %v1266_v33, %v493_v42 }
 0x2af   :  { %v906_v45 = vpop.eup %905  ;;  %v521_v46 = vpack.c.bf16 %v513_v43, %v513_v43 }
 0x2b0   :  { %v496_v47 = vmul.f32 %v906_v45, %v1225_v53 }
 0x2b1   :  { %836 = vmatmul.msk.bf16.vlgmr.msra.gmra.mxu3 %vm242_vm2, %v521_v46 }
 0x2b2   :  { %504 = vst.msk [vmem:[#allocation13 + $0x28] sm:$0xff] %vm242_vm2, %v496_v47  ;;  %v516_v48 = vmul.f32 %v510_v44, %v496_v47 }
 0x2b4   :  { %v524_v49 = vpack.c.bf16 %v516_v48, %v516_v48  ;;  %v859_v48 = vld [vmem:[#allocation11 + $0x8] sm:$0xff] }
 0x2b6   :  { %839 = vmatmul.msk.bf16.vlgmr.msrb.gmra.mxu2 %vm242_vm2, %v524_v49  ;;  %v193_v60 = vpop.permute.xlu0 %192  ;;  %v858_v49 = vld [vmem:[#allocation11] sm:$0xff] }
 0x2b7   :  { %198 = vst.msk [vmem:[#allocation4 + $0x18] sm:$0xf] %vm120_vm1, %v193_v60 }
 0x2be   :  { %v533_v0 = vld [vmem:[#allocation4 + $0x18] sm:$0xf] }
 0x2bf   :  { %v654_v50 = vsel %vm538_vm3, %v533_v0, 0 }
 0x2c0   :  { %v220_v51 = vpop.permute.xlu1 %219  ;;  %663 = vmatpush.bf16.msrb.mxu3 %v654_v50 }
 0x2c1   :  { %225 = vst.msk [vmem:[#allocation4 + $0x1c] sm:$0xf] %vm120_vm1, %v220_v51  ;;  %v882_v51 = vld [vmem:[%s1335_s5] ss:$0 sm:$0xff] }
 0x2c8   :  { %v534_v52 = vld [vmem:[#allocation4 + $0x1c] sm:$0xf] }
 0x2c9   :  { %v673_v53 = vsel %vm538_vm3, %v534_v52, 0 }
 0x2ca   :  { %682 = vmatpush.bf16.msra.mxu0 %v673_v53 }
 0x2de   :  { %v461_v56 = vpop.xlane.xlu2 %460 }
 0x2df   :  { %907 = vrcp.f32 %v461_v56 }
 0x2e1   :  { %v482_v57 = vpop.xlane.xlu0 %481 }
 0x2e2   :  { %909 = vrcp.f32 %v482_v57 }
 0x2e5   :  { %v908_v58 = vpop.eup %907 }
 0x2e6   :  { %v491_v59 = vmul.f32 %v908_v58, %v1244_v21  ;;  %v479_v61 = vpop.xlane.xlu2 %478 }
 0x2e7   :  { %911 = vrcp.f32 %v479_v61 }
 0x2e8   :  { %v910_v62 = vpop.eup %909  ;;  %499 = vst.msk [vmem:[#allocation13] sm:$0xff] %vm242_vm2, %v491_v59  ;;  %v511_v16 = vmul.f32 %v1266_v33, %v491_v59 }
 0x2e9   :  { %v498_v63 = vmul.f32 %v910_v62, %v1246_v23 }
 0x2ea   :  { %v519_v20 = vpack.c.bf16 %v511_v16, %v511_v16 }
 0x2eb   :  { %506 = vst.msk [vmem:[#allocation13 + $0x38] sm:$0xff] %vm242_vm2, %v498_v63  ;;  %v518_v1 = vmul.f32 %v510_v44, %v498_v63  ;;  %v473_v4 = vpop.xlane.xlu1 %472 }
 0x2ec   :  { %913 = vrcp.f32 %v473_v4 }
 0x2ed   :  { %v912_v5 = vpop.eup %911  ;;  %v526_v6 = vpack.c.bf16 %v518_v1, %v518_v1 }
 0x2ee   :  { %v497_v7 = vmul.f32 %v912_v5, %v1252_v26  ;;  %v136_v8 = vpop.permute.xlu2 %135 }
 0x2ef   :  { %141 = vst.msk [vmem:[#allocation4] sm:$0xf] %vm120_vm1, %v136_v8  ;;  %841 = vmatmul.msk.bf16.vlgmr.msra.gmra.mxu0 %vm242_vm2, %v526_v6 }
 0x2f0   :  { %505 = vst.msk [vmem:[#allocation13 + $0x30] sm:$0xff] %vm242_vm2, %v497_v7  ;;  %v517_v10 = vmul.f32 %v510_v44, %v497_v7 }
 0x2f2   :  { %v914_v11 = vpop.eup %913  ;;  %v525_v12 = vpack.c.bf16 %v517_v10, %v517_v10 }
 0x2f3   :  { %v495_v13 = vmul.f32 %v914_v11, %v1256_v28 }
 0x2f4   :  { %840 = vmatmul.msk.bf16.vlgmr.msrb.gmra.mxu3 %vm242_vm2, %v525_v12  ;;  %v138_v15 = vpop.permute.xlu0 %137 }
 0x2f5   :  { %503 = vst.msk [vmem:[#allocation13 + $0x20] sm:$0xff] %vm242_vm2, %v495_v13  ;;  %v515_v23 = vmul.f32 %v510_v44, %v495_v13 }
 0x2f6   :  { %142 = vst.msk [vmem:[#allocation4 + $0x10] sm:$0xf] %vm120_vm1, %v138_v15  ;;  %v527_v17 = vld [vmem:[#allocation4] sm:$0xf]  ;;  %804 = dma.vmem_to_hbm [thread:$0]  %s797_s11, 1024, %s799_s15, [#allocation14], %s1047_s13, %s1047_s13, %s1048_s2  }
 0x2f7   :  { %v540_v19 = vsel %vm538_vm3, %v527_v17, 0  ;;  %v523_v24 = vpack.c.bf16 %v515_v23, %v515_v23 }
 0x2f8   :  { %549 = vmatpush.bf16.msra.mxu1 %v540_v19 }
 0x2fb   :  { %834 = vmatmul.msk.bf16.vlgmr.msra.gmra.mxu1 %vm242_vm2, %v519_v20 }
 0x2fd   :  { %v531_v18 = vld [vmem:[#allocation4 + $0x10] sm:$0xf] }
 0x2fe   :  { %v616_v21 = vsel %vm538_vm3, %v531_v18, 0 }
 0x2ff   :  { %625 = vmatpush.bf16.msrb.mxu1 %v616_v21 }
 0x303   :  { %767 = vmatpush.bf16.msra.mxu1 %v859_v48 }
 0x307   :  { %768 = vmatpush.bf16.msra.mxu1 %v858_v49 }
 0x30b   :  { %838 = vmatmul.msk.bf16.vlgmr.msrb.gmra.mxu1 %vm242_vm2, %v523_v24 }
 0x326   :  { %v608_v25 = vpop.f32.mrf.mxu0 }
 0x327   :  { %v718_v35 = vpack.c.bf16 %v608_v25, %v608_v25 }
 0x329   :  { %v570_v22 = vpop.f32.mrf.mxu2 }
 0x32a   :  { %v692_v26 = vpack.c.bf16 %v570_v22, %v570_v22 }
 0x32c   :  { %696 = vrot.lane.b32.xlu2 %v692_v26, %s1048_s2 }
 0x32e   :  { %v610_v27 = vpop.f32.mrf.mxu0 }
 0x331   :  { %v572_v28 = vpop.f32.mrf.mxu2 }
 0x334   :  { %v589_v29 = vpop.f32.mrf.mxu3 }
 0x335   :  { %v705_v30 = vpack.c.bf16 %v589_v29, %v589_v29 }
 0x337   :  { %709 = vrot.lane.b32.xlu2 %v705_v30, %s1060_s8 }
 0x339   :  { %v646_v31 = vpop.f32.mrf.mxu2 }
 0x33a   :  { %v693_v33 = vpack.c.bf16 %v646_v31, %v646_v31 }
 0x33c   :  { %v591_v32 = vpop.f32.mrf.mxu3 }
 0x33f   :  { %698 = vrot.lane.b32.xlu2 %v693_v33, %s1048_s2 }
 0x341   :  { %v648_v34 = vpop.f32.mrf.mxu2 }
 0x347   :  { %722 = vrot.lane.b32.xlu2 %v718_v35, %s1061_s9 }
 0x36c   :  { %v684_v36 = vpop.f32.mrf.mxu0 }
 0x36d   :  { %v719_v39 = vpack.c.bf16 %v684_v36, %v684_v36 }
 0x374   :  { %v686_v14 = vpop.f32.mrf.mxu0 }
 0x377   :  { %v665_v37 = vpop.f32.mrf.mxu3 }
 0x378   :  { %v706_v9 = vpack.c.bf16 %v665_v37, %v665_v37  ;;  %v551_v38 = vpop.f32.mrf.mxu1 }
 0x379   :  { %v688_v54 = vpack.c.bf16 %v551_v38, %v551_v38 }
 0x37a   :  { %711 = vrot.lane.b32.xlu0 %v706_v9, %s1060_s8 }
 0x37b   :  { %690 = vst.msk [vmem:[#allocation5] sm:$0xf] %vm120_vm1, %v688_v54 }
 0x37f   :  { %v667_v55 = vpop.f32.mrf.mxu3 }
 0x380   :  { %v553_v40 = vpop.f32.mrf.mxu1 }
 0x382   :  { %724 = vrot.lane.b32.xlu0 %v719_v39, %s1061_s9 }
 0x386   :  { %v697_v41 = vpop.permute.xlu2 %696 }
 0x387   :  { %703 = vst.msk [vmem:[#allocation5] sm:$0xf] %vm702_vm4, %v697_v41 }
 0x388   :  { %v627_v42 = vpop.f32.mrf.mxu1 }
 0x389   :  { %v689_v43 = vpack.c.bf16 %v627_v42, %v627_v42 }
 0x38b   :  { %691 = vst.msk [vmem:[#allocation5 + $0x4] sm:$0xf] %vm120_vm1, %v689_v43 }
 0x390   :  { %v629_v44 = vpop.f32.mrf.mxu1 }
 0x391   :  { %v710_v45 = vpop.permute.xlu2 %709 }
 0x392   :  { %716 = vst.msk [vmem:[#allocation5] sm:$0xf] %vm715_vm5, %v710_v45 }
 0x399   :  { %v699_v46 = vpop.permute.xlu2 %698 }
 0x39a   :  { %704 = vst.msk [vmem:[#allocation5 + $0x4] sm:$0xf] %vm702_vm4, %v699_v46 }
 0x3a1   :  { %v723_v47 = vpop.permute.xlu2 %722 }
 0x3a2   :  { %729 = vst.msk [vmem:[#allocation5] sm:$0xf] %vm728_vm6, %v723_v47 }
 0x3ec   :  { %v712_v60 = vpop.permute.xlu0 %711 }
 0x3ed   :  { %717 = vst.msk [vmem:[#allocation5 + $0x4] sm:$0xf] %vm715_vm5, %v712_v60 }
 0x3f4   :  { %v725_v0 = vpop.permute.xlu0 %724 }
 0x3f5   :  { %730 = vst.msk [vmem:[#allocation5 + $0x4] sm:$0xf] %vm728_vm6, %v725_v0 }
 0x3fc   :  { %v857_v50 = vld [vmem:[#allocation5] sm:$0xff] }
 0x3fd   :  { %854 = vmatmul.msk.bf16.vlgmr.msra.gmra.mxu1 %vm98_vm0, %v857_v50 }
 0x47a   :  { %v770_v52 = vpop.f32.mrf.mxu1 }
 0x47b   :  { %v771_v53 = vadd.f32 %v882_v51, %v770_v52 }
 0x47d   :  { %v775_v56 = vadd.f32 %v771_v53, %v1120_v2 }
 0x47f   :  { %777 = vst.msk [vmem:[#allocation12] sm:$0xff] %vm98_vm0, %v775_v56 }
 0x482   :  { %v772_v57 = vpop.f32.mrf.mxu1 }
 0x483   :  { %v773_v58 = vadd.f32 %v882_v51, %v772_v57 }
 0x485   :  { %v776_v59 = vadd.f32 %v773_v58, %v1122_v3 }
 0x487   :  { %778 = vst.msk [vmem:[#allocation12 + $0x8] sm:$0xff] %vm98_vm0, %v776_v59 }
 0x488   :  { %791 = dma.vmem_to_hbm [thread:$0]  %s784_s4, 256, %s786_s19, [#allocation8], %s1047_s13, %s1047_s13, %s1048_s2  }
 0x489   :  { %1039 = dma.done.wait [#allocation8], 256  }
 0x48a   :  { %1040 = vsyncadd [#allocation8], 4294967040 }
 0x48b   :  { %1041 = dma.done.wait [#allocation14], 1024  }
 0x48c   :  { %1042 = vsyncadd [#allocation14], 4294966272 }
 0x48d   :  { %813 = vsyncpa [#allocation7], 1 }
 0x48e   :  { %814 = vsyncpa [#allocation10], 1 }
 0x48f   :  { %815 = vsyncpa [#allocation8], 1 }
 0x490   :  { %816 = vsyncpa [#allocation14], 1 }

</bundles_post_ra>
